<compile_context>
chip_gen: v5e
topology: v5e:2x2
jax: 0.10.0
libtpu: 0.0.40
codegen_flags: <defaults>
</compile_context>

<pallas_src>
import functools

import jax
import jax.numpy as jnp
from jax.experimental import pallas as pl
from jax.experimental.pallas import tpu as pltpu

LANE = 128          # vreg lane width
_SPLIT_ROWS = 256   # batches larger than this get >= 2 grid steps (v7x megacore)


def _round_up(n, m):
    return ((n + m - 1) // m) * m


def _fused_mlp_kernel(*refs, num_layers):
    """refs = (x_ref, w0, b0, w1, b1, ..., w_{L-1}, b_{L-1}, o_ref).

    Computes y = (ReLU o Linear)^(L-1) then Linear, entirely in VMEM/vregs.
    Weights/activations are bf16; every matmul accumulates in f32 on the MXU,
    bias add + ReLU run on the f32 accumulator (safe on v5e).
    """
    x_ref = refs[0]
    o_ref = refs[-1]
    wb = refs[1:-1]

    h = x_ref[...]                                        # compute dtype (bf16)
    for i in range(num_layers):
        w = wb[2 * i][...]                                # compute dtype (bf16)
        b = wb[2 * i + 1][...]                            # f32 bias
        acc = jnp.dot(h, w, preferred_element_type=jnp.float32) + b
        if i < num_layers - 1:
            h = jnp.maximum(acc, 0.0).astype(w.dtype)     # back to bf16 for next MXU pass
        else:
            h = acc                                       # keep final f32 accumulator
    # Store only the true output columns (masked vst): with n_output=1 this is
    # ~128x fewer HBM write bytes than storing the lane-padded slab.
    o_ref[...] = h[:, : o_ref.shape[1]].astype(o_ref.dtype)


def init_params(key, layer_sizes, dtype=jnp.float32):
    """PyTorch nn.Linear-style init: U(-1/sqrt(fan_in), +1/sqrt(fan_in)).

    Stored transposed vs PyTorch: w is (in_features, out_features), b is (1, out).
    """
    params = []
    for i in range(len(layer_sizes) - 1):
        fan_in, fan_out = layer_sizes[i], layer_sizes[i + 1]
        key, wk, bk = jax.random.split(key, 3)
        bound = 1.0 / (fan_in ** 0.5)
        w = jax.random.uniform(wk, (fan_in, fan_out), dtype, -bound, bound)
        b = jax.random.uniform(bk, (1, fan_out), dtype, -bound, bound)
        params.append((w, b))
    return params


def pad_params(params, compute_dtype=jnp.bfloat16):
    """Zero-pad feature dims to multiples of 128 (lane-dense MXU tiles).

    Weights are stored in `compute_dtype` (bf16 halves HBM/VMEM traffic);
    biases stay f32 so the bias add happens on the f32 accumulator.
    Zero padding keeps the real output columns numerically exact.
    """
    padded = []
    for w, b in params:
        fin, fout = w.shape
        fin_p, fout_p = _round_up(fin, LANE), _round_up(fout, LANE)
        w_p = jnp.zeros((fin_p, fout_p), compute_dtype).at[:fin, :fout].set(
            w.astype(compute_dtype))
        b_p = jnp.zeros((1, fout_p), jnp.float32).at[:, :fout].set(
            b.astype(jnp.float32))
        padded.append((w_p, b_p))
    return padded


def _pick_batch_tiling(B, batch_tile, row_align):
    """Choose (tb, B_p): large lane-dense tiles, >=2 grid steps when splittable."""
    B_r = _round_up(B, row_align)
    tb = min(batch_tile, B_r)
    # If the whole batch fits in one tile but is big enough to split, force two
    # grid steps so v7x megacore ("parallel" axis) can use both TensorCores.
    if tb == B_r and B_r > _SPLIT_ROWS:
        tb = _round_up(pl.cdiv(B_r, 2), row_align)
    B_p = _round_up(B_r, tb)
    return tb, B_p


def net_relu_forward(x, padded_params, n_output, *, batch_tile=2048,
                     out_dtype=jnp.float32):
    """Fused forward pass: one pallas_call for the whole MLP."""
    B, Fin = x.shape
    num_layers = len(padded_params)
    compute_dtype = padded_params[0][0].dtype
    Fin_p = padded_params[0][0].shape[0]
    assert Fin <= Fin_p

    # Row alignment: 16 rows for 16-bit dtypes (sublane packing), 8 for f32.
    row_align = 16 if jnp.dtype(compute_dtype).itemsize == 2 else 8
    tb, B_p = _pick_batch_tiling(B, batch_tile, row_align)
    num_tiles = B_p // tb

    # Zero-pad activations: padded feature columns hit zero weight rows (exact),
    # padded batch rows are sliced off after the call.
    # TODO(synk): optionally read x at its true 96-lane width and pad in-kernel
    # to shave ~25% of input read bytes (validate with a bundle dump first).
    x_c = jnp.zeros((B_p, Fin_p), compute_dtype).at[:B, :Fin].set(
        x.astype(compute_dtype))

    flat_wb = [a for wb in padded_params for a in wb]

    in_specs = [pl.BlockSpec((tb, Fin_p), lambda i: (i, 0))]
    for w, b in padded_params:
        # Constant index_map -> block is kept VMEM-resident across grid steps.
        in_specs.append(pl.BlockSpec(w.shape, lambda i: (0, 0)))
        in_specs.append(pl.BlockSpec(b.shape, lambda i: (0, 0)))

    # Advisory cost estimate with real dtypes and the true output width.
    flops = 2 * B_p * sum(int(w.shape[0]) * int(w.shape[1]) for w, _ in padded_params)
    bytes_accessed = (
        int(x_c.size) * x_c.dtype.itemsize
        + sum(int(a.size) * a.dtype.itemsize for a in flat_wb)
        + B_p * n_output * jnp.dtype(out_dtype).itemsize
    )

    # Only raise the scoped VMEM limit if the double-buffered tiles need it
    # (relevant for v5e's 16 MiB scoped default at very large batch tiles).
    vmem_est = (
        4 * tb * Fin_p * jnp.dtype(compute_dtype).itemsize      # in blocks, 2x buffered
        + 4 * tb * n_output * jnp.dtype(out_dtype).itemsize     # out blocks, 2x buffered
        + sum(int(a.size) * a.dtype.itemsize for a in flat_wb)  # resident weights
        + (2 << 20)                                             # headroom
    )
    compiler_params = pltpu.CompilerParams(
        dimension_semantics=("parallel",),   # megacore sharding on v7x, harmless elsewhere
        vmem_limit_bytes=vmem_est if vmem_est > (12 << 20) else None,
    )

    out = pl.pallas_call(
        functools.partial(_fused_mlp_kernel, num_layers=num_layers),
        out_shape=jax.ShapeDtypeStruct((B_p, n_output), out_dtype),
        grid=(num_tiles,),
        in_specs=in_specs,
        out_specs=pl.BlockSpec((tb, n_output), lambda i: (i, 0)),
        compiler_params=compiler_params,
        cost_estimate=pl.CostEstimate(
            flops=flops, transcendentals=0, bytes_accessed=bytes_accessed
        ),
    )(x_c, *flat_wb)

    # Strip batch padding only; lane padding never leaves the kernel.
    return out[:B, :]


if __name__ == "__main__":
    # Synthetic gel_data-like constants: W=4, G=4, D=4, T=8
    W_, G_, D_, T_ = 4, 4, 4, 8
    n_input = W_ * T_ + G_ * T_ + D_ * T_   # 96
    n_output = 1
    arch = [64, 32]
    layer_sizes = [n_input] + arch + [n_output]

    batch = 8
    key = jax.random.PRNGKey(0)
    key, xkey, pkey = jax.random.split(key, 3)
    x = jax.random.normal(xkey, (batch, n_input), jnp.float32)
    params = init_params(pkey, layer_sizes)
    padded = pad_params(params, compute_dtype=jnp.bfloat16)   # done once, like a module buffer

    out = net_relu_forward(x, padded, n_output)
    out = jax.block_until_ready(out)
    assert out.shape == (batch, n_output), out.shape

    # Reference #1: mimic kernel numerics exactly (bf16 operands, f32 accumulation).
    h = x.astype(jnp.bfloat16)
    for i, (w, b) in enumerate(params):
        acc = jnp.dot(h, w.astype(jnp.bfloat16),
                      preferred_element_type=jnp.float32) + b.astype(jnp.float32)
        h = jnp.maximum(acc, 0.0).astype(jnp.bfloat16) if i < len(params) - 1 else acc
    err1 = float(jnp.max(jnp.abs(out - h)))
    assert jnp.allclose(out, h, atol=2e-3, rtol=2e-3), err1

    # Reference #2: plain f32 forward; loose tolerance covers bf16 quantization.
    ref = x
    for w, b in params[:-1]:
        ref = jnp.maximum(ref @ w + b, 0.0)
    ref = ref @ params[-1][0] + params[-1][1]
    err2 = float(jnp.max(jnp.abs(out - ref)))
    assert jnp.allclose(out, ref, atol=5e-2, rtol=5e-2), err2

    print("KERNEL_OK")
</pallas_src>

<mosaic_0001>
module attributes {stable_mosaic.version = 11 : i64} {
  func.func @_fused_mlp_kernel(%arg0: i32, %arg1: memref<16x128xbf16, #tpu.memory_space<vmem>>, %arg2: memref<128x128xbf16, #tpu.memory_space<vmem>>, %arg3: memref<1x128xf32, #tpu.memory_space<vmem>>, %arg4: memref<128x128xbf16, #tpu.memory_space<vmem>>, %arg5: memref<1x128xf32, #tpu.memory_space<vmem>>, %arg6: memref<128x128xbf16, #tpu.memory_space<vmem>>, %arg7: memref<1x128xf32, #tpu.memory_space<vmem>>, %arg8: memref<16x1xf32, #tpu.memory_space<vmem>>) attributes {dimension_semantics = [#tpu.dimension_semantics<parallel>], iteration_bounds = array<i64: 1>, scalar_prefetch = 0 : i64, scratch_operands = 0 : i64, tpu.core_type = #tpu.core_type<tc>, window_params = [{transform_indices = @transform_0, window_bounds = array<i64: 16, 128>}, {pipeline_mode = #tpu.pipeline_mode<synchronous>, transform_indices = @transform_1, window_bounds = array<i64: 128, 128>}, {pipeline_mode = #tpu.pipeline_mode<synchronous>, transform_indices = @transform_2, window_bounds = array<i64: 1, 128>}, {pipeline_mode = #tpu.pipeline_mode<synchronous>, transform_indices = @transform_3, window_bounds = array<i64: 128, 128>}, {pipeline_mode = #tpu.pipeline_mode<synchronous>, transform_indices = @transform_4, window_bounds = array<i64: 1, 128>}, {pipeline_mode = #tpu.pipeline_mode<synchronous>, transform_indices = @transform_5, window_bounds = array<i64: 128, 128>}, {pipeline_mode = #tpu.pipeline_mode<synchronous>, transform_indices = @transform_6, window_bounds = array<i64: 1, 128>}, {transform_indices = @transform_7, window_bounds = array<i64: 16, 1>}]} {
    %c0 = arith.constant 0 : index
    %c0_0 = arith.constant 0 : index
    %0 = vector.load %arg1[%c0, %c0_0] : memref<16x128xbf16, #tpu.memory_space<vmem>>, vector<16x128xbf16>
    %c0_1 = arith.constant 0 : index
    %c0_2 = arith.constant 0 : index
    %1 = vector.load %arg2[%c0_1, %c0_2] : memref<128x128xbf16, #tpu.memory_space<vmem>>, vector<128x128xbf16>
    %c0_3 = arith.constant 0 : index
    %c0_4 = arith.constant 0 : index
    %2 = vector.load %arg3[%c0_3, %c0_4] : memref<1x128xf32, #tpu.memory_space<vmem>>, vector<1x128xf32>
    %cst = arith.constant dense<0.000000e+00> : vector<16x128xf32>
    %3 = tpu.matmul %0, %1, %cst {dimension_numbers = #tpu.dot_dimension_numbers<[1], [0], [0], [1], [0, 0, 1, 1], [], []>} : vector<16x128xbf16>, vector<128x128xbf16>, vector<16x128xf32> -> vector<16x128xf32>
    %4 = vector.broadcast %2 : vector<1x128xf32> to vector<16x128xf32>
    %5 = arith.addf %3, %4 : vector<16x128xf32>
    %cst_5 = arith.constant 0.000000e+00 : f32
    %6 = vector.broadcast %cst_5 : f32 to vector<16x128xf32>
    %7 = arith.maximumf %5, %6 : vector<16x128xf32>
    %8 = arith.truncf %7 : vector<16x128xf32> to vector<16x128xbf16>
    %c0_6 = arith.constant 0 : index
    %c0_7 = arith.constant 0 : index
    %9 = vector.load %arg4[%c0_6, %c0_7] : memref<128x128xbf16, #tpu.memory_space<vmem>>, vector<128x128xbf16>
    %c0_8 = arith.constant 0 : index
    %c0_9 = arith.constant 0 : index
    %10 = vector.load %arg5[%c0_8, %c0_9] : memref<1x128xf32, #tpu.memory_space<vmem>>, vector<1x128xf32>
    %cst_10 = arith.constant dense<0.000000e+00> : vector<16x128xf32>
    %11 = tpu.matmul %8, %9, %cst_10 {dimension_numbers = #tpu.dot_dimension_numbers<[1], [0], [0], [1], [0, 0, 1, 1], [], []>} : vector<16x128xbf16>, vector<128x128xbf16>, vector<16x128xf32> -> vector<16x128xf32>
    %12 = vector.broadcast %10 : vector<1x128xf32> to vector<16x128xf32>
    %13 = arith.addf %11, %12 : vector<16x128xf32>
    %cst_11 = arith.constant 0.000000e+00 : f32
    %14 = vector.broadcast %cst_11 : f32 to vector<16x128xf32>
    %15 = arith.maximumf %13, %14 : vector<16x128xf32>
    %16 = arith.truncf %15 : vector<16x128xf32> to vector<16x128xbf16>
    %c0_12 = arith.constant 0 : index
    %c0_13 = arith.constant 0 : index
    %17 = vector.load %arg6[%c0_12, %c0_13] : memref<128x128xbf16, #tpu.memory_space<vmem>>, vector<128x128xbf16>
    %c0_14 = arith.constant 0 : index
    %c0_15 = arith.constant 0 : index
    %18 = vector.load %arg7[%c0_14, %c0_15] : memref<1x128xf32, #tpu.memory_space<vmem>>, vector<1x128xf32>
    %cst_16 = arith.constant dense<0.000000e+00> : vector<16x128xf32>
    %19 = tpu.matmul %16, %17, %cst_16 {dimension_numbers = #tpu.dot_dimension_numbers<[1], [0], [0], [1], [0, 0, 1, 1], [], []>} : vector<16x128xbf16>, vector<128x128xbf16>, vector<16x128xf32> -> vector<16x128xf32>
    %20 = vector.broadcast %18 : vector<1x128xf32> to vector<16x128xf32>
    %21 = arith.addf %19, %20 : vector<16x128xf32>
    %22 = vector.extract_strided_slice %21 {offsets = [0, 0], sizes = [16, 1], strides = [1, 1]} : vector<16x128xf32> to vector<16x1xf32>
    %c0_17 = arith.constant 0 : index
    %c0_18 = arith.constant 0 : index
    %23 = vector.load %arg8[%c0_17, %c0_18] : memref<16x1xf32, #tpu.memory_space<vmem>>, vector<16x1xf32>
    tpu.vector_store %arg8[%c0_17, %c0_18], %22 {strides = array<i32>} : memref<16x1xf32, #tpu.memory_space<vmem>>, vector<16x1xf32>,
    return
  }
  func.func @transform_0(%arg0: i32) -> (i32, i32) {
    %c0_i32 = arith.constant 0 : i32
    %c0_i32_0 = arith.constant 0 : i32
    return %arg0, %c0_i32 : i32, i32
  }
  func.func @transform_1(%arg0: i32) -> (i32, i32) {
    %c0_i32 = arith.constant 0 : i32
    %c0_i32_0 = arith.constant 0 : i32
    %c0_i32_1 = arith.constant 0 : i32
    return %c0_i32, %c0_i32_0 : i32, i32
  }
  func.func @transform_2(%arg0: i32) -> (i32, i32) {
    %c0_i32 = arith.constant 0 : i32
    %c0_i32_0 = arith.constant 0 : i32
    %c0_i32_1 = arith.constant 0 : i32
    return %c0_i32, %c0_i32_0 : i32, i32
  }
  func.func @transform_3(%arg0: i32) -> (i32, i32) {
    %c0_i32 = arith.constant 0 : i32
    %c0_i32_0 = arith.constant 0 : i32
    %c0_i32_1 = arith.constant 0 : i32
    return %c0_i32, %c0_i32_0 : i32, i32
  }
  func.func @transform_4(%arg0: i32) -> (i32, i32) {
    %c0_i32 = arith.constant 0 : i32
    %c0_i32_0 = arith.constant 0 : i32
    %c0_i32_1 = arith.constant 0 : i32
    return %c0_i32, %c0_i32_0 : i32, i32
  }
  func.func @transform_5(%arg0: i32) -> (i32, i32) {
    %c0_i32 = arith.constant 0 : i32
    %c0_i32_0 = arith.constant 0 : i32
    %c0_i32_1 = arith.constant 0 : i32
    return %c0_i32, %c0_i32_0 : i32, i32
  }
  func.func @transform_6(%arg0: i32) -> (i32, i32) {
    %c0_i32 = arith.constant 0 : i32
    %c0_i32_0 = arith.constant 0 : i32
    %c0_i32_1 = arith.constant 0 : i32
    return %c0_i32, %c0_i32_0 : i32, i32
  }
  func.func @transform_7(%arg0: i32) -> (i32, i32) {
    %c0_i32 = arith.constant 0 : i32
    %c0_i32_0 = arith.constant 0 : i32
    return %arg0, %c0_i32 : i32, i32
  }
}

</mosaic_0001>

<bundles_post_ra>
// kernel: tpu_custom_call.1
= control target key start
LH: loop header
LB: loop body
LE: loop exit
PB: predicated region body
PF: predicated region fallthrough
CT: control target
= control target key end

     0   :  { %12 = vsyncpa [#allocation3], 0  ;;  %s668_s0 = inlined_call_operand.hbm [shape: bf16[16,128], index: 0, kind: input, shape index: {}]   ;;  %s669_s1 = inlined_call_operand.hbm [shape: bf16[128,128], index: 1, kind: input, shape index: {}]   ;;  %s670_s2 = inlined_call_operand.vmem [shape: f32[1,128], index: 2, kind: input, shape index: {}]   ;;  %s671_s3 = inlined_call_operand.hbm [shape: bf16[128,128], index: 3, kind: input, shape index: {}]   ;;  %s672_s4 = inlined_call_operand.vmem [shape: f32[1,128], index: 4, kind: input, shape index: {}]   ;;  %s673_s5 = inlined_call_operand.hbm [shape: bf16[128,128], index: 5, kind: input, shape index: {}]   ;;  %s674_s6 = inlined_call_operand.vmem [shape: f32[1,128], index: 6, kind: input, shape index: {}]   ;;  %s675_s7 = inlined_call_operand.vmem [shape: f32[16,1], index: 7, kind: output, shape index: {}]  }
   0x1   :  { %13 = vsyncpa [#allocation5], 0 }
   0x2   :  { %14 = vsyncpa [#allocation8], 0  ;;  %s32_s26 = sshll.u32 %s669_s1, 4  ;;  %s595_s27 = smov [#allocation4]   ;;  %s33_s26 = int_to_ptr.hbm [resolvable:$true] %s32_s26 }
   0x3   :  { %s34_s28 = sshll.u32 %s595_s27, 4  ;;  %s19_s8 = sshll.u32 %s668_s0, 4  ;;  %s35_s28 = int_to_ptr.vmem [resolvable:$true] %s34_s28  ;;  %s20_s8 = int_to_ptr.hbm [resolvable:$true] %s19_s8 }
   0x4   :  { %s596_s9 = smov 64   ;;  %s597_s10 = smov 4  }
   0x5   :  { %40 = dma.hbm_to_vmem [thread:$0]  %s33_s26, 1024, %s35_s28, [#allocation5], %s596_s9, %s596_s9, %s597_s10  }
   0x6   :  { %s598_s11 = smov [#allocation2]   ;;  %s47_s15 = sshll.u32 %s671_s3, 4  ;;  %s48_s15 = int_to_ptr.hbm [resolvable:$true] %s47_s15 }
   0x7   :  { %s21_s12 = sshll.u32 %s598_s11, 4  ;;  %s62_s17 = sshll.u32 %s673_s5, 4  ;;  %s22_s12 = int_to_ptr.vmem [resolvable:$true] %s21_s12  ;;  %s63_s17 = int_to_ptr.hbm [resolvable:$true] %s62_s17 }
   0x8   :  { %27 = dma.hbm_to_vmem [thread:$0]  %s20_s8, 128, %s22_s12, [#allocation3], %s596_s9, %s596_s9, %s597_s10  }
   0x9   :  { %s599_s18 = smov [#allocation6]   ;;  %s600_s0 = smov [#allocation7]  }
   0xa   :  { %s49_s19 = sshll.u32 %s599_s18, 4  ;;  %s64_s20 = sshll.u32 %s600_s0, 4  ;;  %s50_s19 = int_to_ptr.vmem [resolvable:$true] %s49_s19  ;;  %s65_s20 = int_to_ptr.vmem [resolvable:$true] %s64_s20 }
   0xb   :  { %55 = dma.hbm_to_vmem [thread:$0]  %s48_s15, 1024, %s50_s19, [#allocation5], %s596_s9, %s596_s9, %s597_s10  }
   0xc   :  { %70 = dma.hbm_to_vmem [thread:$0]  %s63_s17, 1024, %s65_s20, [#allocation8], %s596_s9, %s596_s9, %s597_s10  }
   0xd   :  { %589 = dma.done.wait [#allocation3], 128  }
   0xe   :  { %590 = vsyncadd [#allocation3], 4294967168 }
   0xf   :  { %591 = dma.done.wait [#allocation5], 2048  }
  0x10   :  { %592 = vsyncadd [#allocation5], 4294965248 }
  0x11   :  { %593 = dma.done.wait [#allocation8], 1024  }
  0x12   :  { %594 = vsyncadd [#allocation8], 4294966272  ;;  %v467_v0 = vld [vmem:[#allocation4 + $0x38] sm:$0xff]  ;;  %v466_v1 = vld [vmem:[#allocation4 + $0x30] sm:$0xff]  ;;  %vm349_vm0 = vcmask 7168  }
  0x13   :  { %165 = vmatpush.bf16.msra.mxu0 %v467_v0  ;;  %v475_v2 = vld [vmem:[#allocation6 + $0x38] sm:$0xff]  ;;  %v474_v3 = vld [vmem:[#allocation6 + $0x30] sm:$0xff]  ;;  %v465_v4 = vld [vmem:[#allocation4 + $0x28] sm:$0xff] }
  0x14   :  { %250 = vmatpush.bf16.msra.mxu1 %v475_v2  ;;  %v473_v5 = vld [vmem:[#allocation6 + $0x28] sm:$0xff]  ;;  %v464_v6 = vld [vmem:[#allocation4 + $0x20] sm:$0xff]  ;;  %v463_v8 = vld [vmem:[#allocation4 + $0x18] sm:$0xff] }
  0x15   :  { %v472_v7 = vld [vmem:[#allocation6 + $0x20] sm:$0xff]  ;;  %v462_v9 = vld [vmem:[#allocation4 + $0x10] sm:$0xff]  ;;  %v461_v10 = vld [vmem:[#allocation4 + $0x8] sm:$0xff] }
  0x16   :  { %v460_v11 = vld [vmem:[#allocation4] sm:$0xff]  ;;  %v459_v12 = vld [vmem:[#allocation2] sm:$0xff]  ;;  %v470_v14 = vld [vmem:[#allocation6 + $0x10] sm:$0xff] }
  0x17   :  { %166 = vmatpush.bf16.msra.mxu0 %v466_v1  ;;  %v471_v13 = vld [vmem:[#allocation6 + $0x18] sm:$0xff]  ;;  %v469_v15 = vld [vmem:[#allocation6 + $0x8] sm:$0xff]  ;;  %v468_v16 = vld [vmem:[#allocation6] sm:$0xff] }
  0x18   :  { %251 = vmatpush.bf16.msra.mxu1 %v474_v3  ;;  %v483_v17 = vld [vmem:[#allocation7 + $0x38] sm:$0xff]  ;;  %v482_v18 = vld [vmem:[#allocation7 + $0x30] sm:$0xff]  ;;  %v481_v19 = vld [vmem:[#allocation7 + $0x28] sm:$0xff] }
  0x19   :  { %335 = vmatpush.bf16.msra.mxu2 %v483_v17  ;;  %v480_v20 = vld [vmem:[#allocation7 + $0x20] sm:$0xff]  ;;  %v490_v22 = vld [vmem:[%s670_s2] ss:$0 sm:$0xff]  ;;  %v478_v30 = vld [vmem:[#allocation7 + $0x10] sm:$0xff] }
  0x1a   :  { %v479_v29 = vld [vmem:[#allocation7 + $0x18] sm:$0xff]  ;;  %v477_v31 = vld [vmem:[#allocation7 + $0x8] sm:$0xff]  ;;  %v476_v32 = vld [vmem:[#allocation7] sm:$0xff] }
  0x1b   :  { %167 = vmatpush.bf16.msra.mxu0 %v465_v4  ;;  %v491_v34 = vld [vmem:[%s672_s4] ss:$0 sm:$0xff] }
  0x1c   :  { %252 = vmatpush.bf16.msra.mxu1 %v473_v5  ;;  %v492_v41 = vld [vmem:[%s674_s6] ss:$0 sm:$0xff] }
  0x1d   :  { %336 = vmatpush.bf16.msra.mxu2 %v482_v18 }
  0x1f   :  { %168 = vmatpush.bf16.msra.mxu0 %v464_v6 }
  0x20   :  { %253 = vmatpush.bf16.msra.mxu1 %v472_v7 }
  0x21   :  { %337 = vmatpush.bf16.msra.mxu2 %v481_v19 }
  0x23   :  { %169 = vmatpush.bf16.msra.mxu0 %v463_v8 }
  0x24   :  { %254 = vmatpush.bf16.msra.mxu1 %v471_v13 }
  0x25   :  { %338 = vmatpush.bf16.msra.mxu2 %v480_v20 }
  0x27   :  { %170 = vmatpush.bf16.msra.mxu0 %v462_v9 }
  0x28   :  { %255 = vmatpush.bf16.msra.mxu1 %v470_v14 }
  0x29   :  { %339 = vmatpush.bf16.msra.mxu2 %v479_v29 }
  0x2b   :  { %171 = vmatpush.bf16.msra.mxu0 %v461_v10 }
  0x2c   :  { %256 = vmatpush.bf16.msra.mxu1 %v469_v15 }
  0x2d   :  { %340 = vmatpush.bf16.msra.mxu2 %v478_v30 }
  0x2f   :  { %172 = vmatpush.bf16.msra.mxu0 %v460_v11 }
  0x30   :  { %257 = vmatpush.bf16.msra.mxu1 %v468_v16 }
  0x31   :  { %341 = vmatpush.bf16.msra.mxu2 %v477_v31 }
  0x32   :  { %173 = vmatmul.bf16.vlgmr.msra.gmra.mxu0 %v459_v12 }
  0x35   :  { %342 = vmatpush.bf16.msra.mxu2 %v476_v32 }
  0xaf   :  { %v174_v21 = vpop.f32.mrf.mxu0 }
  0xb0   :  { %v175_v23 = vadd.f32 %v490_v22, %v174_v21 }
  0xb2   :  { %v179_v26 = vmax.f32 %v175_v23, 0.0 }
  0xb7   :  { %v176_v24 = vpop.f32.mrf.mxu0 }
  0xb8   :  { %v177_v25 = vadd.f32 %v490_v22, %v176_v24 }
  0xba   :  { %v180_v27 = vmax.f32 %v177_v25, 0.0 }
  0xbc   :  { %v181_v28 = vpack.c.bf16 %v180_v27, %v179_v26 }
  0xbe   :  { %258 = vmatmul.bf16.vlgmr.msra.gmra.mxu1 %v181_v28 }
 0x13b   :  { %v259_v33 = vpop.f32.mrf.mxu1 }
 0x13c   :  { %v260_v35 = vadd.f32 %v491_v34, %v259_v33 }
 0x13e   :  { %v264_v38 = vmax.f32 %v260_v35, 0.0 }
 0x143   :  { %v261_v36 = vpop.f32.mrf.mxu1 }
 0x144   :  { %v262_v37 = vadd.f32 %v491_v34, %v261_v36 }
 0x146   :  { %v265_v39 = vmax.f32 %v262_v37, 0.0 }
 0x148   :  { %v266_v40 = vpack.c.bf16 %v265_v39, %v264_v38 }
 0x14a   :  { %343 = vmatmul.bf16.vlgmr.msra.gmra.mxu2 %v266_v40 }
 0x1cd   :  { %v344_v42 = vpop.f32.mrf.mxu2 }
 0x1ce   :  { %v345_v43 = vadd.f32 %v492_v41, %v344_v42 }
 0x1d0   :  { %350 = vst.msk [vmem:[%s675_s7] sm:$0xff] %vm349_vm0, %v345_v43 }
 0x1d5   :  { %v346_v44 = vpop.f32.mrf.mxu2 }
 0x1d6   :  { %v347_v45 = vadd.f32 %v492_v41, %v346_v44 }
 0x1d8   :  { %351 = vst.msk [vmem:[%s675_s7 + $0x8] sm:$0xff] %vm349_vm0, %v347_v45 }
 0x1d9   :  { %356 = vsyncpa [#allocation3], 1 }
 0x1da   :  { %357 = vsyncpa [#allocation5], 1 }
 0x1db   :  { %358 = vsyncpa [#allocation8], 1 }

</bundles_post_ra>
